<compile_context>
chip_gen: v7x
topology: tpu7x:2x2x1
jax: 0.10.0
libtpu: 0.0.40
codegen_flags: <defaults>
</compile_context>

<pallas_src>
import jax
import jax.numpy as jnp
from jax.experimental import pallas as pl
from jax.experimental.pallas import tpu as pltpu


def _round_up(n, m):
    return ((n + m - 1) // m) * m


def _pick_tile(dim, align, max_tile):
    """Pick a block size for `dim`. Returns (tile, padded_dim).

    Small dims get a full-extent (possibly unaligned) block -> zero padding.
    Large dims get the largest `align`-multiple <= max_tile that divides the
    minimally padded dim, so already-aligned Linear shapes need no padding.
    """
    if dim <= max_tile:
        return dim, dim
    padded = _round_up(dim, align)
    t = max((max_tile // align) * align, align)
    while padded % t:
        t -= align
    return t, padded


def _linear_kernel_acc_out(x_ref, w_ref, b_ref, o_ref):
    """f32-output variant: accumulate straight into the resident output block."""
    k = pl.program_id(2)

    @pl.when(k == 0)
    def _init():
        # Seed the accumulator with the bias -> no separate epilogue pass.
        o_ref[...] = jnp.broadcast_to(b_ref[...].astype(jnp.float32),
                                      o_ref.shape)

    o_ref[...] += jnp.dot(x_ref[...], w_ref[...],
                          preferred_element_type=jnp.float32)


def _linear_kernel_scratch(x_ref, w_ref, b_ref, o_ref, acc_ref):
    """Generic variant: f32 scratch accumulator, bias add + downcast once."""
    k = pl.program_id(2)

    @pl.when(k == 0)
    def _init():
        acc_ref[...] = jnp.zeros_like(acc_ref)

    acc_ref[...] += jnp.dot(x_ref[...], w_ref[...],
                            preferred_element_type=jnp.float32)

    @pl.when(k == pl.num_programs(2) - 1)
    def _finalize():
        o_ref[...] = (acc_ref[...]
                      + b_ref[...].astype(jnp.float32)).astype(o_ref.dtype)


def mm_encoder(x, w_t, b, *, tm=512, tn=512, tk=1024,
               compute_dtype=jnp.bfloat16):
    """y = x @ w_t + b.

    x:   [..., in_feature]            (leading dims folded into M, like nn.Linear)
    w_t: [in_feature, out_feature]    (transpose of the PyTorch Linear weight)
    b:   [out_feature]
    """
    orig_shape = x.shape
    in_f = orig_shape[-1]
    x2 = x.reshape(-1, in_f)
    M = x2.shape[0]
    K, N = w_t.shape
    assert in_f == K, (in_f, K)

    out_dtype = x.dtype

    # Feed the MXU bf16 operands (bf16 peak + half the HBM bytes); accumulation
    # stays in f32, so numerics are bf16-in / f32-accumulate, documented below.
    if compute_dtype is not None and x2.dtype != compute_dtype:
        x2 = x2.astype(compute_dtype)
    if compute_dtype is not None and w_t.dtype != compute_dtype:
        w_t = w_t.astype(compute_dtype)

    tm, Mp = _pick_tile(M, 8, tm)
    tk, Kp = _pick_tile(K, 128, tk)
    tn, Np = _pick_tile(N, 128, tn)

    # Expose >= 2 blocks on a "parallel" axis so a v7x megacore (2 TCs) gets
    # work on both cores; no-op / harmless on 1-TC v5e/v6e.
    if Mp // tm == 1 and Np // tn == 1 and tn % 256 == 0:
        tn //= 2

    xp = x2 if (Mp == M and Kp == K) else jnp.pad(x2, ((0, Mp - M), (0, Kp - K)))
    wp = w_t if (Kp == K and Np == N) else jnp.pad(w_t, ((0, Kp - K), (0, Np - N)))
    bp = b.reshape(1, N)
    if Np != N:
        bp = jnp.pad(bp, ((0, 0), (0, Np - N)))

    grid = (Mp // tm, Np // tn, Kp // tk)

    out_itemsize = jnp.dtype(out_dtype).itemsize
    cost = pl.CostEstimate(
        flops=2 * M * K * N,
        transcendentals=0,
        bytes_accessed=(xp.size * xp.dtype.itemsize
                        + wp.size * wp.dtype.itemsize
                        + bp.size * bp.dtype.itemsize
                        + Mp * Np * out_itemsize))

    in_specs = [
        pl.BlockSpec((tm, tk), lambda i, j, k: (i, k)),   # x tile
        pl.BlockSpec((tk, tn), lambda i, j, k: (k, j)),   # w_t tile
        pl.BlockSpec((1, tn), lambda i, j, k: (0, j)),    # bias slice
    ]
    out_spec = pl.BlockSpec((tm, tn), lambda i, j, k: (i, j))

    if out_dtype == jnp.float32:
        # Output block is resident across the K axis; accumulate into it
        # directly and skip the scratch buffer + epilogue copy.
        kernel = _linear_kernel_acc_out
        scratch_shapes = []
    else:
        kernel = _linear_kernel_scratch
        scratch_shapes = [pltpu.VMEM((tm, tn), jnp.float32)]

    out = pl.pallas_call(
        kernel,
        out_shape=jax.ShapeDtypeStruct((Mp, Np), out_dtype),
        grid_spec=pltpu.PrefetchScalarGridSpec(
            num_scalar_prefetch=0,
            grid=grid,
            in_specs=in_specs,
            out_specs=out_spec,
            scratch_shapes=scratch_shapes),
        compiler_params=pltpu.CompilerParams(
            dimension_semantics=("parallel", "parallel", "arbitrary"),
            vmem_limit_bytes=32 * 1024 * 1024),
        cost_estimate=cost,
    )(xp, wp, bp)

    y = out if (Mp == M and Np == N) else out[:M, :N]
    return y.reshape(orig_shape[:-1] + (N,))


if __name__ == "__main__":
    # Small shapes consistent with MMEncoder(in_feature, out_feature); the seq
    # dim is folded into the batch axis (as nn.Linear does over leading dims).
    batch, seq, in_feature, out_feature = 4, 8, 32, 64

    key = jax.random.PRNGKey(0)
    kx, kw, kb = jax.random.split(key, 3)

    # PyTorch Linear weight is [out, in]; the kernel consumes its transpose.
    bound = 1.0 / (in_feature ** 0.5)
    w_pt = jax.random.uniform(kw, (out_feature, in_feature),
                              minval=-bound, maxval=bound, dtype=jnp.float32)
    b = jax.random.uniform(kb, (out_feature,),
                           minval=-bound, maxval=bound, dtype=jnp.float32)
    x = jax.random.normal(kx, (batch, seq, in_feature), dtype=jnp.float32)

    w_t = jnp.transpose(w_pt)  # [in_feature, out_feature]

    y = mm_encoder(x, w_t, b)
    y = jax.block_until_ready(y)

    # Reference with the same bf16 operand quantization (kernel accumulates in
    # f32), computed at highest XLA precision.
    xb = x.astype(jnp.bfloat16).astype(jnp.float32)
    wb = w_t.astype(jnp.bfloat16).astype(jnp.float32)
    y_ref = jnp.matmul(xb, wb, precision=jax.lax.Precision.HIGHEST) + b

    assert y.shape == (batch, seq, out_feature)
    assert y.dtype == x.dtype
    assert jnp.allclose(y, y_ref, atol=1e-4, rtol=1e-4)

    print("KERNEL_OK")
</pallas_src>

<mosaic_0001>
module attributes {stable_mosaic.version = 11 : i64} {
  func.func @_linear_kernel_acc_out(%arg0: i32, %arg1: i32, %arg2: i32, %arg3: memref<32x32xbf16, #tpu.memory_space<vmem>>, %arg4: memref<32x64xbf16, #tpu.memory_space<vmem>>, %arg5: memref<1x64xf32, #tpu.memory_space<vmem>>, %arg6: memref<32x64xf32, #tpu.memory_space<vmem>>) attributes {dimension_semantics = [#tpu.dimension_semantics<parallel>, #tpu.dimension_semantics<parallel>, #tpu.dimension_semantics<arbitrary>], iteration_bounds = array<i64: 1, 1, 1>, scalar_prefetch = 0 : i64, scratch_operands = 0 : i64, tpu.core_type = #tpu.core_type<tc>, window_params = [{transform_indices = @transform_0, window_bounds = array<i64: 32, 32>}, {transform_indices = @transform_1, window_bounds = array<i64: 32, 64>}, {transform_indices = @transform_2, window_bounds = array<i64: 1, 64>}, {transform_indices = @transform_3, window_bounds = array<i64: 32, 64>}]} {
    %c0_i32 = arith.constant 0 : i32
    %0 = arith.cmpi eq, %arg2, %c0_i32 : i32
    %1 = arith.extui %0 : i1 to i32
    %c0_i32_0 = arith.constant 0 : i32
    %2 = arith.cmpi ne, %1, %c0_i32_0 : i32
    scf.if %2 {
      %c0_8 = arith.constant 0 : index
      %c0_9 = arith.constant 0 : index
      %9 = vector.load %arg5[%c0_8, %c0_9] : memref<1x64xf32, #tpu.memory_space<vmem>>, vector<1x64xf32>
      %10 = vector.shape_cast %9 : vector<1x64xf32> to vector<1x64xf32>
      %11 = vector.broadcast %10 : vector<1x64xf32> to vector<32x64xf32>
      %c0_10 = arith.constant 0 : index
      %c0_11 = arith.constant 0 : index
      %12 = vector.load %arg6[%c0_10, %c0_11] : memref<32x64xf32, #tpu.memory_space<vmem>>, vector<32x64xf32>
      tpu.vector_store %arg6[%c0_10, %c0_11], %11 {strides = array<i32>} : memref<32x64xf32, #tpu.memory_space<vmem>>, vector<32x64xf32>,
    } else {
    }
    %c0 = arith.constant 0 : index
    %c0_1 = arith.constant 0 : index
    %3 = vector.load %arg6[%c0, %c0_1] : memref<32x64xf32, #tpu.memory_space<vmem>>, vector<32x64xf32>
    %c0_2 = arith.constant 0 : index
    %c0_3 = arith.constant 0 : index
    %4 = vector.load %arg3[%c0_2, %c0_3] : memref<32x32xbf16, #tpu.memory_space<vmem>>, vector<32x32xbf16>
    %c0_4 = arith.constant 0 : index
    %c0_5 = arith.constant 0 : index
    %5 = vector.load %arg4[%c0_4, %c0_5] : memref<32x64xbf16, #tpu.memory_space<vmem>>, vector<32x64xbf16>
    %cst = arith.constant dense<0.000000e+00> : vector<32x64xf32>
    %6 = tpu.matmul %4, %5, %cst {dimension_numbers = #tpu.dot_dimension_numbers<[1], [0], [0], [1], [0, 0, 1, 1], [], []>} : vector<32x32xbf16>, vector<32x64xbf16>, vector<32x64xf32> -> vector<32x64xf32>
    %7 = arith.addf %3, %6 : vector<32x64xf32>
    %c0_6 = arith.constant 0 : index
    %c0_7 = arith.constant 0 : index
    %8 = vector.load %arg6[%c0_6, %c0_7] : memref<32x64xf32, #tpu.memory_space<vmem>>, vector<32x64xf32>
    tpu.vector_store %arg6[%c0_6, %c0_7], %7 {strides = array<i32>} : memref<32x64xf32, #tpu.memory_space<vmem>>, vector<32x64xf32>,
    return
  }
  func.func @transform_0(%arg0: i32, %arg1: i32, %arg2: i32) -> (i32, i32) {
    %c0_i32 = arith.constant 0 : i32
    return %arg0, %arg2 : i32, i32
  }
  func.func @transform_1(%arg0: i32, %arg1: i32, %arg2: i32) -> (i32, i32) {
    %c0_i32 = arith.constant 0 : i32
    return %arg2, %arg1 : i32, i32
  }
  func.func @transform_2(%arg0: i32, %arg1: i32, %arg2: i32) -> (i32, i32) {
    %c0_i32 = arith.constant 0 : i32
    %c0_i32_0 = arith.constant 0 : i32
    return %c0_i32, %arg1 : i32, i32
  }
  func.func @transform_3(%arg0: i32, %arg1: i32, %arg2: i32) -> (i32, i32) {
    %c0_i32 = arith.constant 0 : i32
    return %arg0, %arg1 : i32, i32
  }
}

</mosaic_0001>

<bundles_post_ra>
// kernel: tpu_custom_call.1
= control target key start
LH: loop header
LB: loop body
LE: loop exit
PB: predicated region body
PF: predicated region fallthrough
CT: control target
= control target key end

     0   :  { %8 = vsyncpa [#allocation3], 0  ;;  %s353_s0 = inlined_call_operand.hbm [shape: bf16[32,32], index: 0, kind: input, shape index: {}]   ;;  %s354_s1 = inlined_call_operand.hbm [shape: bf16[32,64], index: 1, kind: input, shape index: {}]   ;;  %s355_s2 = inlined_call_operand.vmem [shape: f32[1,64], index: 2, kind: input, shape index: {}]   ;;  %s356_s3 = inlined_call_operand.hbm [shape: f32[32,64], index: 3, kind: output, shape index: {}]  }
   0x1   :  { %9 = vsyncpa [#allocation6], 0 }
   0x2   :  { %10 = vsyncpa [#allocation4], 0  ;;  %s279_s12 = smov [#allocation2]   ;;  %s207_s16 = scalar_lea.hbm %s353_s0, 256 }
   0x3   :  { %s16_s13 = sshll.u32 %s279_s12, 4  ;;  %p208_p0 = scmp.ne.s32.totalorder %s353_s0, %s207_s16  ;;  %s17_s13 = int_to_ptr.vmem [resolvable:$true] %s16_s13 }
   0x4   :  { %p211_p1 = scmp.lt.u32.totalorder %s207_s16, %s353_s0 }
   0x6   :  { %p213_p2 = pnand %p211_p1, %p208_p0 }
   0x8   :  { %216 = shalt.err (!%p213_p2)
}
   0x9   :  { %s217_s21 = scalar_lea.vmem %s17_s13, 256  ;;  %p222_p4 = scmp.lt.s32.totalorder %s17_s13, %s17_s13 }
   0xa   :  { %p218_p3 = scmp.ne.s32.totalorder %s17_s13, %s217_s21  ;;  %p223_p5 = scmp.lt.s32.totalorder %s217_s21, %s217_s21 }
   0xc   :  { %p224_p6 = por %p223_p5, %p222_p4 }
   0xe   :  { %p225_p7 = pnand %p224_p6, %p218_p3 }
  0x10   :  { %228 = shalt.err (!%p225_p7)
}
  0x11   :  { %s280_s22 = smov 64   ;;  %s281_s23 = smov 4  }
  0x12   :  { %22 = dma.hbm_to_vmem [thread:$0]  %s353_s0, 256, %s17_s13, [#allocation3], %s280_s22, %s280_s22, %s281_s23  }
  0x13   :  { %s282_s26 = smov [#allocation5]   ;;  %s229_s30 = scalar_lea.hbm %s354_s1, 256 }
  0x14   :  { %s28_s27 = sshll.u32 %s282_s26, 4  ;;  %p230_p8 = scmp.ne.s32.totalorder %s354_s1, %s229_s30  ;;  %s29_s27 = int_to_ptr.vmem [resolvable:$true] %s28_s27 }
  0x15   :  { %p233_p9 = scmp.lt.u32.totalorder %s229_s30, %s354_s1 }
  0x17   :  { %p235_p10 = pnand %p233_p9, %p230_p8 }
  0x19   :  { %238 = shalt.err (!%p235_p10)
}
  0x1a   :  { %s239_s8 = scalar_lea.vmem %s29_s27, 256  ;;  %p244_p12 = scmp.lt.s32.totalorder %s29_s27, %s29_s27 }
  0x1b   :  { %p240_p11 = scmp.ne.s32.totalorder %s29_s27, %s239_s8  ;;  %p245_p13 = scmp.lt.s32.totalorder %s239_s8, %s239_s8 }
  0x1d   :  { %p246_p0 = por %p245_p13, %p244_p12 }
  0x1f   :  { %p247_p1 = pnand %p246_p0, %p240_p11 }
  0x21   :  { %250 = shalt.err (!%p247_p1)
}
  0x22   :  { %34 = dma.hbm_to_vmem [thread:$0]  %s354_s1, 256, %s29_s27, [#allocation6], %s280_s22, %s280_s22, %s281_s23  }
  0x23   :  { %273 = dma.done.wait [#allocation3], 256  }
  0x24   :  { %274 = vsyncadd [#allocation3], 4294967040 }
  0x25   :  { %275 = dma.done.wait [#allocation6], 256  }
  0x26   :  { %276 = vsyncadd [#allocation6], 4294967040  ;;  %v203_v0 = vld [vmem:[#allocation5] sm:$0xff]   ;;  %v204_v1 = vld [vmem:[#allocation5 + $0x8] sm:$0xff]   ;;  %vm94_vm0 = vcmask 261120   ;;  %vm55_vm1 = vcmask 523264  }
  0x27   :  { %188 = vmatprep.subr.bf16.mxu0 %v203_v0  ;;  %v205_v2 = vld [vmem:[#allocation2] sm:$0xff]   ;;  %v206_v4 = vld [vmem:[#allocation2 + $0x8] sm:$0xff]   ;;  %s283_s1 = smov [#allocation7]  }
  0x28   :  { %189 = vmatpush3.bf16.msra.mxu0 %v203_v0  ;;  %192 = vmatprep.mubr.msk.bf16.mxu0 %vm94_vm0, %v205_v2  ;;  %v177_v3 = vld [vmem:[%s355_s2] ss:$0 sm:$0xff]  ;;  %s164_s12 = sshll.u32 %s283_s1, 4  ;;  %s165_s12 = int_to_ptr.vmem [resolvable:$true] %s164_s12 }
  0x29   :  { %190 = vmatprep.subr.bf16.mxu0 %v204_v1  ;;  %58 = vst.msk [vmem:[#allocation7 + $0x10] sm:$0xff] %vm55_vm1, %v177_v3  ;;  %56 = vst.msk [vmem:[#allocation7] sm:$0xff] %vm55_vm1, %v177_v3  ;;  %s251_s2 = scalar_lea.vmem %s165_s12, 512  ;;  %p256_p3 = scmp.lt.s32.totalorder %s165_s12, %s165_s12 }
  0x2a   :  { %57 = vst.msk [vmem:[#allocation7 + $0x8] sm:$0xff] %vm55_vm1, %v177_v3  ;;  %59 = vst.msk [vmem:[#allocation7 + $0x18] sm:$0xff] %vm55_vm1, %v177_v3  ;;  %p252_p2 = scmp.ne.s32.totalorder %s165_s12, %s251_s2  ;;  %p257_p4 = scmp.lt.s32.totalorder %s251_s2, %s251_s2 }
  0x2c   :  { %191 = vmatpush3.bf16.msra.mxu0 %v204_v1  ;;  %p258_p5 = por %p257_p4, %p256_p3 }
  0x2e   :  { %p259_p6 = pnand %p258_p5, %p252_p2 }
  0x2f   :  { %193 = vmatmul.mubr.msk.bf16.vlgmr.msra.gmra.mrb[0].mxu0 %vm94_vm0, %v206_v4 }
  0x30   :  { %v62_v5 = vld [vmem:[#allocation7 + $0x10] sm:$0xff]  ;;  %v60_v6 = vld [vmem:[#allocation7] sm:$0xff] }
  0x31   :  { %v63_v8 = vld [vmem:[#allocation7 + $0x18] sm:$0xff]  ;;  %v61_v11 = vld [vmem:[#allocation7 + $0x8] sm:$0xff] }
 0x102   :  { %v194_v7 = vpop.f32.mrb[0].mxu0 }
 0x103   :  { %v152_v9 = vadd.f32 %v194_v7, %v62_v5  ;;  %v135_v10 = vpop.f32.mrb[1].mxu0 }
 0x104   :  { %v150_v12 = vadd.f32 %v135_v10, %v60_v6  ;;  %v195_v13 = vpop.f32.mrb[2].mxu0 }
 0x105   :  { %157 = vst.msk [vmem:[#allocation7 + $0x10] sm:$0xff] %vm55_vm1, %v152_v9  ;;  %v153_v14 = vadd.f32 %v195_v13, %v63_v8  ;;  %v138_v15 = vpop.f32.mrb[3].mxu0 }
 0x106   :  { %155 = vst.msk [vmem:[#allocation7] sm:$0xff] %vm55_vm1, %v150_v12  ;;  %v151_v16 = vadd.f32 %v138_v15, %v61_v11 }
 0x107   :  { %158 = vst.msk [vmem:[#allocation7 + $0x18] sm:$0xff] %vm55_vm1, %v153_v14 }
 0x108   :  { %156 = vst.msk [vmem:[#allocation7 + $0x8] sm:$0xff] %vm55_vm1, %v151_v16 }
 0x109   :  { %262 = shalt.err (!%p259_p6)
}
 0x10a   :  { %s263_s15 = scalar_lea.hbm %s356_s3, 512 }
 0x10b   :  { %p264_p7 = scmp.ne.s32.totalorder %s356_s3, %s263_s15  ;;  %p267_p8 = scmp.lt.u32.totalorder %s263_s15, %s356_s3 }
 0x10d   :  { %p269_p9 = pnand %p267_p8, %p264_p7 }
 0x10f   :  { %272 = shalt.err (!%p269_p9)
}
 0x110   :  { %s284_s20 = smov 128   ;;  %s285_s21 = smov 8  }
 0x111   :  { %170 = dma.vmem_to_hbm [thread:$0]  %s165_s12, 512, %s356_s3, [#allocation4], %s284_s20, %s284_s20, %s285_s21  }
 0x112   :  { %277 = dma.done.wait [#allocation4], 512  }
 0x113   :  { %278 = vsyncadd [#allocation4], 4294966784 }
 0x114   :  { %174 = vsyncpa [#allocation3], 1 }
 0x115   :  { %175 = vsyncpa [#allocation6], 1 }
 0x116   :  { %176 = vsyncpa [#allocation4], 1 }

</bundles_post_ra>
